<compile_context>
chip_gen: v5e
topology: v5e:2x2
jax: 0.10.0
libtpu: 0.0.40
codegen_flags: <defaults>
</compile_context>

<pallas_src>
import math

import jax
import jax.numpy as jnp
from jax.experimental import pallas as pl
from jax.experimental.pallas import tpu as pltpu

EPS = 1e-6


# --------------------------------------------------------------------------
# Tiled path kernels
# --------------------------------------------------------------------------
def _revin_stats_kernel(sa_ref, sb_ref, x_ref, sum_ref, sumsq_ref, acc_s, acc_q):
    """Accumulate per-lane-slot sum and sum-of-squares of d = x*sa + sb.

    x_ref: (TRG, 8, Cp) row tile (8 = sublane group, Cp = packed lane width).
    sa_ref/sb_ref: (1, Cp) broadcast coefficients (pre-affine + shift).
    Outputs (1, Cp) partial sums, written once at the last grid step.
    """
    @pl.when(pl.program_id(0) == 0)
    def _init():
        acc_s[...] = jnp.zeros_like(acc_s)
        acc_q[...] = jnp.zeros_like(acc_q)

    x = x_ref[...].astype(jnp.float32)                 # (TRG, 8, Cp)
    d = x * sa_ref[...] + sb_ref[...]                  # broadcast FMA
    # Reduce over the leading (untiled) axis only: pure VALU vreg adds per tile.
    acc_s[...] += jnp.sum(d, axis=0)                   # (8, Cp)
    acc_q[...] += jnp.sum(d * d, axis=0)               # (8, Cp)

    @pl.when(pl.program_id(0) == pl.num_programs(0) - 1)
    def _fin():
        # Single cross-sublane (XLU) reduce, once in the epilogue.
        sum_ref[...] = jnp.sum(acc_s[...], axis=0, keepdims=True)
        sumsq_ref[...] = jnp.sum(acc_q[...], axis=0, keepdims=True)


def _revin_apply_kernel(a_ref, b_ref, x_ref, o_ref):
    """Fused per-element affine: out = x * A + B (lane-dense tiles)."""
    x = x_ref[...].astype(jnp.float32)
    o_ref[...] = (x * a_ref[...] + b_ref[...]).astype(o_ref.dtype)


# --------------------------------------------------------------------------
# Small single-block fast-path kernels
# --------------------------------------------------------------------------
def _revin_small_norm_kernel(x_ref, aff_ref, bias_ref, o_ref):
    x = x_ref[...].astype(jnp.float32)                 # (N, C)
    n = x.shape[0]
    mean = jnp.mean(x, axis=0, keepdims=True)
    d = x - mean
    denom = max(n - 1, 1)                              # ddof=1; guard N==1 (torch -> NaN)
    var = jnp.sum(d * d, axis=0, keepdims=True) / denom
    # Reciprocal on the tiny (1, C) row; no per-element divide.  approx=False:
    # the vector is tiny so there is no perf benefit to approx, keep numerics tight.
    inv = pl.reciprocal(jnp.sqrt(var) + EPS, approx=False)
    scale = inv * aff_ref[...].astype(jnp.float32)
    o_ref[...] = (d * scale + bias_ref[...].astype(jnp.float32)).astype(o_ref.dtype)


def _revin_small_denorm_kernel(x_ref, aff_ref, bias_ref, o_ref):
    x = x_ref[...].astype(jnp.float32)
    n = x.shape[0]
    inv_aff = pl.reciprocal(aff_ref[...].astype(jnp.float32) + EPS, approx=False)
    y = (x - bias_ref[...].astype(jnp.float32)) * inv_aff
    mean = jnp.mean(y, axis=0, keepdims=True)
    d = y - mean
    denom = max(n - 1, 1)
    var = jnp.sum(d * d, axis=0, keepdims=True) / denom
    std = jnp.sqrt(var)
    o_ref[...] = (y * (std + EPS) + mean).astype(o_ref.dtype)


# --------------------------------------------------------------------------
# Wrappers
# --------------------------------------------------------------------------
def _revin_small(x, affine, bias, mode):
    # Single block: whole (N, C) array resident in VMEM (only used when tiny).
    # Lane-packing is intentionally skipped here: tiny instances can't amortize
    # it and often have N < G; the tiled path handles all large instances.
    B, L, C = x.shape
    x2 = x.reshape(B * L, C)
    aff2 = affine.reshape(1, C).astype(jnp.float32)
    bias2 = bias.reshape(1, C).astype(jnp.float32)
    kernel = _revin_small_norm_kernel if mode == "norm" else _revin_small_denorm_kernel
    full = pl.BlockSpec((B * L, C), lambda: (0, 0))
    prm = pl.BlockSpec((1, C), lambda: (0, 0))
    out = pl.pallas_call(
        kernel,
        out_shape=jax.ShapeDtypeStruct((B * L, C), x.dtype),
        grid=(),
        in_specs=[full, prm, prm],
        out_specs=full,
    )(x2, aff2, bias2)
    return out.reshape(B, L, C)


def _revin_tiled(x, affine, bias, mode, tile_rows):
    B, L, C = x.shape
    N = B * L
    f32 = jnp.float32

    affine32 = affine.astype(f32)
    bias32 = bias.astype(f32)

    # Pre-affine applied before the stats (identity for norm; (x-bias)/(affine+eps)
    # for denorm, expressed as a multiply so the kernels never divide per element).
    if mode == "norm":
        pre_a = jnp.ones((C,), f32)
        pre_b = jnp.zeros((C,), f32)
    else:
        inv_aff = 1.0 / (affine32 + EPS)               # tiny (C,) vector, off the hot path
        pre_a = inv_aff
        pre_b = -bias32 * inv_aff

    # Lane packing: (N, C) -> (Np, Cp) with Cp = lcm(C, 128) (full-lane tiles).
    Cp = (C * 128) // math.gcd(C, 128)
    G = Cp // C

    # Shift (per feature) ~ first pre-transformed sample: avoids catastrophic
    # cancellation in the sum/sumsq variance combine.
    x00 = x[0, 0, :].astype(f32)
    shift = x00 * pre_a + pre_b

    # Tile rows in packed space: multiple of 8, bounded so a tile stays <= ~4 MiB
    # (comfortable with double buffering inside a 32 MiB scoped-VMEM budget,
    # including v7x's smaller physical VMEM).
    max_rows = max(8, (((4 * 1024 * 1024) // (Cp * 4)) // 8) * 8)
    Np = -(-N // G)
    tr = min(tile_rows, max_rows, ((Np + 7) // 8) * 8)
    tr = max(8, (tr // 8) * 8)
    num_tiles = -(-Np // tr)
    Np_pad = num_tiles * tr
    N_pad = Np_pad * G

    x2 = x.reshape(N, C)
    if N_pad > N:
        # Fill padded rows with the first sample so their shifted deviation is ~0
        # (they contribute nothing to sum/sumsq; stats divide by the true N).
        fill = jnp.broadcast_to(x[0, 0, :], (N_pad - N, C)).astype(x.dtype)
        x2 = jnp.concatenate([x2, fill], axis=0)
    xpk = x2.reshape(Np_pad, Cp)                        # lane-dense packed view
    x3 = xpk.reshape(Np_pad // 8, 8, Cp)                # free reshape for the stats pass

    sa_pk = jnp.tile(pre_a, G).reshape(1, Cp)
    sb_pk = jnp.tile(pre_b - shift, G).reshape(1, Cp)

    trg = tr // 8
    row_spec3 = pl.BlockSpec((trg, 8, Cp), lambda i: (i, 0, 0))
    prm_spec = pl.BlockSpec((1, Cp), lambda i: (0, 0))

    # ---- pass 1: streaming stats ------------------------------------------
    sum_pk, sq_pk = pl.pallas_call(
        _revin_stats_kernel,
        out_shape=(jax.ShapeDtypeStruct((1, Cp), f32),
                   jax.ShapeDtypeStruct((1, Cp), f32)),
        grid=(num_tiles,),
        in_specs=[prm_spec, prm_spec, row_spec3],
        out_specs=(prm_spec, prm_spec),
        scratch_shapes=[pltpu.VMEM((8, Cp), f32), pltpu.VMEM((8, Cp), f32)],
        compiler_params=pltpu.CompilerParams(
            dimension_semantics=("arbitrary",),
            vmem_limit_bytes=32 * 1024 * 1024),
    )(sa_pk, sb_pk, x3)

    # ---- tiny per-feature combine (C-length math, plain JAX) ---------------
    sum_d = jnp.sum(sum_pk.reshape(G, C), axis=0)
    sq_d = jnp.sum(sq_pk.reshape(G, C), axis=0)
    denom = max(N - 1, 1)                               # ddof=1; guard B*L == 1 (torch -> NaN)
    mean_y = shift + sum_d / N
    var_y = jnp.maximum(sq_d - sum_d * sum_d / N, 0.0) / denom
    std_y = jnp.sqrt(var_y)

    if mode == "norm":
        A = affine32 / (std_y + EPS)                    # out = (x-mean)/(std+eps)*affine + bias
        Bc = bias32 - mean_y * A
    else:
        A = pre_a * (std_y + EPS)                       # out = ((x-bias)/(aff+eps))*(std+eps) + mean
        Bc = pre_b * (std_y + EPS) + mean_y

    A_pk = jnp.tile(A, G).reshape(1, Cp)
    B_pk = jnp.tile(Bc, G).reshape(1, Cp)

    # ---- pass 2: fused elementwise apply (lane-dense, parallel over tiles) --
    row_spec2 = pl.BlockSpec((tr, Cp), lambda i: (i, 0))
    out_pk = pl.pallas_call(
        _revin_apply_kernel,
        out_shape=jax.ShapeDtypeStruct((Np_pad, Cp), x.dtype),
        grid=(num_tiles,),
        in_specs=[prm_spec, prm_spec, row_spec2],
        out_specs=row_spec2,
        compiler_params=pltpu.CompilerParams(
            dimension_semantics=("parallel",),
            vmem_limit_bytes=32 * 1024 * 1024),
    )(A_pk, B_pk, xpk)

    return out_pk.reshape(N_pad, C)[:N].reshape(B, L, C)


def revin_forward(x, affine, bias, mode="norm", *, tile_rows=2048,
                  small_bytes=2 * 1024 * 1024):
    """x: (B, L, C); affine, bias: (C,). Returns array of same shape/dtype as x."""
    assert mode in ("norm", "denorm")
    B, L, C = x.shape
    nbytes = B * L * C * 4                               # f32 working-set estimate
    if nbytes <= small_bytes:
        return _revin_small(x, affine, bias, mode)
    return _revin_tiled(x, affine, bias, mode, tile_rows)


def revin_reference(x, affine, bias, mode="norm"):
    """Pure-JAX reference matching the PyTorch module."""
    x = x.astype(jnp.float32)
    if mode == "norm":
        mean = jnp.mean(x, axis=(0, 1), keepdims=True)
        std = jnp.std(x, axis=(0, 1), keepdims=True, ddof=1)
        x = (x - mean) / (std + EPS)
        x = x * affine + bias
    else:
        x = (x - bias) / (affine + EPS)
        mean = jnp.mean(x, axis=(0, 1), keepdims=True)
        std = jnp.std(x, axis=(0, 1), keepdims=True, ddof=1)
        x = x * (std + EPS) + mean
    return x


if __name__ == "__main__":
    key = jax.random.PRNGKey(0)
    k1, k2 = jax.random.split(key)

    # ---- small instance (single-block fast path) ----------------------------
    B, L, C = 2, 8, 4
    x = jax.random.normal(k1, (B, L, C), dtype=jnp.float32) * 2.0 + 0.5
    affine = 1.0 + 0.1 * jnp.arange(C, dtype=jnp.float32)
    bias = 0.05 * jnp.arange(C, dtype=jnp.float32)

    out = jax.block_until_ready(revin_forward(x, affine, bias, mode="norm"))
    ref = revin_reference(x, affine, bias, mode="norm")
    assert jnp.allclose(out, ref, atol=1e-4, rtol=1e-4), "norm mismatch (small)"

    den = jax.block_until_ready(revin_forward(out, affine, bias, mode="denorm"))
    den_ref = revin_reference(out, affine, bias, mode="denorm")
    assert jnp.allclose(den, den_ref, atol=1e-4, rtol=1e-4), "denorm mismatch (small)"

    # ---- larger instance: exercise the tiled, lane-packed two-pass path -----
    Bt, Lt, Ct = 16, 1024, 4
    xt = jax.random.normal(k2, (Bt, Lt, Ct), dtype=jnp.float32) * 3.0 + 10.0
    affine_t = 1.0 + 0.1 * jnp.arange(Ct, dtype=jnp.float32)
    bias_t = 0.05 * jnp.arange(Ct, dtype=jnp.float32)

    out_t = jax.block_until_ready(
        revin_forward(xt, affine_t, bias_t, mode="norm",
                      tile_rows=128, small_bytes=0))     # force the tiled path
    ref_t = revin_reference(xt, affine_t, bias_t, mode="norm")
    assert jnp.allclose(out_t, ref_t, atol=1e-4, rtol=1e-4), "norm mismatch (tiled)"

    den_t = jax.block_until_ready(
        revin_forward(out_t, affine_t, bias_t, mode="denorm",
                      tile_rows=128, small_bytes=0))
    den_ref_t = revin_reference(out_t, affine_t, bias_t, mode="denorm")
    assert jnp.allclose(den_t, den_ref_t, atol=1e-4, rtol=1e-4), "denorm mismatch (tiled)"

    print("KERNEL_OK")
</pallas_src>

<mosaic_0001>
module attributes {stable_mosaic.version = 11 : i64} {
  func.func @_revin_small_norm_kernel(%arg0: memref<16x4xf32, #tpu.memory_space<vmem>>, %arg1: memref<1x4xf32, #tpu.memory_space<vmem>>, %arg2: memref<1x4xf32, #tpu.memory_space<vmem>>, %arg3: memref<16x4xf32, #tpu.memory_space<vmem>>) attributes {dimension_semantics = [], scalar_prefetch = 0 : i64, scratch_operands = 0 : i64, tpu.core_type = #tpu.core_type<tc>} {
    %c0 = arith.constant 0 : index
    %c0_0 = arith.constant 0 : index
    %0 = vector.load %arg0[%c0, %c0_0] : memref<16x4xf32, #tpu.memory_space<vmem>>, vector<16x4xf32>
    %cst = arith.constant dense<0.000000e+00> : vector<4xf32>
    %1 = vector.multi_reduction <add>, %0, %cst [0] : vector<16x4xf32> to vector<4xf32>
    %2 = vector.shape_cast %1 : vector<4xf32> to vector<1x4xf32>
    %cst_1 = arith.constant 1.600000e+01 : f32
    %3 = vector.broadcast %cst_1 : f32 to vector<1x4xf32>
    %4 = arith.divf %2, %3 : vector<1x4xf32>
    %5 = vector.broadcast %4 : vector<1x4xf32> to vector<16x4xf32>
    %6 = arith.subf %0, %5 : vector<16x4xf32>
    %7 = arith.mulf %6, %6 : vector<16x4xf32>
    %cst_2 = arith.constant dense<0.000000e+00> : vector<4xf32>
    %8 = vector.multi_reduction <add>, %7, %cst_2 [0] : vector<16x4xf32> to vector<4xf32>
    %9 = vector.shape_cast %8 : vector<4xf32> to vector<1x4xf32>
    %cst_3 = arith.constant 1.500000e+01 : f32
    %10 = vector.broadcast %cst_3 : f32 to vector<1x4xf32>
    %11 = arith.divf %9, %10 : vector<1x4xf32>
    %12 = math.sqrt %11 : vector<1x4xf32>
    %cst_4 = arith.constant 9.99999997E-7 : f32
    %13 = vector.broadcast %cst_4 : f32 to vector<1x4xf32>
    %14 = arith.addf %12, %13 : vector<1x4xf32>
    %15 = tpu.reciprocal %14 : vector<1x4xf32> -> vector<1x4xf32>
    %c0_5 = arith.constant 0 : index
    %c0_6 = arith.constant 0 : index
    %16 = vector.load %arg1[%c0_5, %c0_6] : memref<1x4xf32, #tpu.memory_space<vmem>>, vector<1x4xf32>
    %17 = arith.mulf %15, %16 : vector<1x4xf32>
    %18 = vector.broadcast %17 : vector<1x4xf32> to vector<16x4xf32>
    %19 = arith.mulf %6, %18 : vector<16x4xf32>
    %c0_7 = arith.constant 0 : index
    %c0_8 = arith.constant 0 : index
    %20 = vector.load %arg2[%c0_7, %c0_8] : memref<1x4xf32, #tpu.memory_space<vmem>>, vector<1x4xf32>
    %21 = vector.broadcast %20 : vector<1x4xf32> to vector<16x4xf32>
    %22 = arith.addf %19, %21 : vector<16x4xf32>
    %c0_9 = arith.constant 0 : index
    %c0_10 = arith.constant 0 : index
    %23 = vector.load %arg3[%c0_9, %c0_10] : memref<16x4xf32, #tpu.memory_space<vmem>>, vector<16x4xf32>
    tpu.vector_store %arg3[%c0_9, %c0_10], %22 {strides = array<i32>} : memref<16x4xf32, #tpu.memory_space<vmem>>, vector<16x4xf32>,
    return
  }
}

</mosaic_0001>

<bundles_post_ra>
// kernel: tpu_custom_call.1
= control target key start
LH: loop header
LB: loop body
LE: loop exit
PB: predicated region body
PF: predicated region fallthrough
CT: control target
= control target key end

     0   :  { %vm16_vm0 = vcmask 31744   ;;  %v110_v2 = vmov 16.0   ;;  %v111_v12 = vmov 15.0   ;;  %s156_s0 = inlined_call_operand.vmem [shape: f32[16,4], index: 0, kind: input, shape index: {}]   ;;  %s157_s2 = inlined_call_operand.vmem [shape: f32[1,4], index: 2, kind: input, shape index: {}]   ;;  %s158_s1 = inlined_call_operand.vmem [shape: f32[1,4], index: 1, kind: input, shape index: {}]   ;;  %s159_s3 = inlined_call_operand.vmem [shape: f32[16,4], index: 3, kind: output, shape index: {}]  }
   0x1   :  { %v14_v0 = vld [vmem:[%s156_s0] sm:$0xff]  ;;  %v15_v1 = vld [vmem:[%s156_s0 + $0x8] sm:$0xff]  ;;  %102 = vrcp.f32 %v110_v2 }
   0x2   :  { %v17_v3 = vsel %vm16_vm0, %v14_v0, 0.0  ;;  %v18_v4 = vsel %vm16_vm0, %v15_v1, 0.0  ;;  %104 = vrcp.f32 %v111_v12  ;;  %v82_v59 = vld [vmem:[%s158_s1] sm:$0x1] }
   0x3   :  { %v19_v5 = vadd.f32 %v18_v4, %v17_v3 }
   0x5   :  { %v20_v6 = vrot.slane %v19_v5, 4 }
   0x7   :  { %v103_v7 = vpop.eup %102  ;;  %v21_v8 = vadd.f32 %v20_v6, %v19_v5 }
   0x8   :  { %v27_v9 = vmul.f32 16.0, %v103_v7  ;;  %vm31_vm1 = vweird.f32 %v103_v7  ;;  %v105_v18 = vpop.eup %104 }
   0x9   :  { %v22_v10 = vrot.slane %v21_v8, 2  ;;  %v48_v23 = vmul.f32 15.0, %v105_v18  ;;  %vm52_vm2 = vweird.f32 %v105_v18 }
   0xa   :  { %v28_v11 = vsub.f32 1.0, %v27_v9 }
   0xb   :  { %v23_v13 = vadd.f32 %v22_v10, %v21_v8  ;;  %v49_v28 = vsub.f32 1.0, %v48_v23 }
   0xc   :  { %v29_v14 = vmul.f32 %v103_v7, %v28_v11 }
   0xd   :  { %v24_v15 = vrot.slane %v23_v13, 1  ;;  %v50_v31 = vmul.f32 %v105_v18, %v49_v28 }
   0xe   :  { %v30_v16 = vadd.f32 %v103_v7, %v29_v14 }
   0xf   :  { %v25_v17 = vadd.f32 %v24_v15, %v23_v13  ;;  %v51_v34 = vadd.f32 %v105_v18, %v50_v31 }
  0x10   :  { %v32_v19 = vsel %vm31_vm1, %v103_v7, %v30_v16 }
  0x11   :  { %v33_v20 = vmul.f32 %v32_v19, %v25_v17  ;;  %v53_v37 = vsel %vm52_vm2, %v105_v18, %v51_v34 }
  0x13   :  { %v34_v21 = vsub.f32 %v14_v0, %v33_v20  ;;  %v35_v22 = vsub.f32 %v15_v1, %v33_v20  ;;  %v101_v0 = vld [vmem:[%s157_s2] ss:$0 sm:$0xff] }
  0x15   :  { %v36_v24 = vmul.f32 %v34_v21, %v34_v21  ;;  %v37_v25 = vmul.f32 %v35_v22, %v35_v22 }
  0x17   :  { %v38_v26 = vsel %vm16_vm0, %v36_v24, 0.0  ;;  %v39_v27 = vsel %vm16_vm0, %v37_v25, 0.0 }
  0x18   :  { %v40_v29 = vadd.f32 %v39_v27, %v38_v26 }
  0x1a   :  { %v41_v30 = vrot.slane %v40_v29, 4 }
  0x1c   :  { %v42_v32 = vadd.f32 %v41_v30, %v40_v29 }
  0x1e   :  { %v43_v33 = vrot.slane %v42_v32, 2 }
  0x20   :  { %v44_v35 = vadd.f32 %v43_v33, %v42_v32 }
  0x22   :  { %v45_v36 = vrot.slane %v44_v35, 1 }
  0x24   :  { %v46_v38 = vadd.f32 %v45_v36, %v44_v35 }
  0x26   :  { %v54_v39 = vmul.f32 %v53_v37, %v46_v38 }
  0x28   :  { %106 = vrsqrt.f32 %v54_v39  ;;  %vm62_vm3 = vcmp.eq.f32.partialorder %v54_v39, inf  ;;  %v65_v46 = vand.u32 2147483648, %v54_v39  ;;  %vm64_vm4 = vcmp.eq.f32.partialorder %v54_v39, 0.0 }
  0x2e   :  { %v107_v40 = vpop.eup %106 }
  0x2f   :  { %v56_v41 = vmul.f32 %v107_v40, %v54_v39 }
  0x31   :  { %v57_v42 = vmul.f32 %v107_v40, %v56_v41 }
  0x33   :  { %v58_v43 = vmul.f32 0.5, %v57_v42 }
  0x35   :  { %v59_v44 = vsub.f32 1.5, %v58_v43 }
  0x37   :  { %v60_v45 = vmul.f32 %v107_v40, %v59_v44 }
  0x39   :  { %v61_v47 = vmul.f32 %v60_v45, %v54_v39 }
  0x3b   :  { %v63_v48 = vsel %vm62_vm3, %v54_v39, %v61_v47 }
  0x3c   :  { %v66_v49 = vsel %vm64_vm4, %v65_v46, %v63_v48 }
  0x3d   :  { %v67_v50 = vadd.f32 1e-06, %v66_v49 }
  0x3f   :  { %108 = vrcp.f32 %v67_v50  ;;  %v79_v53 = vand.u32 2147483648, %v67_v50  ;;  %vm73_vm5 = vweird.f32 %v67_v50  ;;  %v77_v55 = vand.u32 2147483647, %v67_v50 }
  0x41   :  { %v80_v57 = vor.u32 1.1754944e-38, %v79_v53  ;;  %vm78_vm8 = vcmp.eq.f32.partialorder %v77_v55, 8.507059e+37 }
  0x45   :  { %v109_v51 = vpop.eup %108 }
  0x46   :  { %v69_v52 = vmul.f32 %v109_v51, %v67_v50  ;;  %vm74_vm6 = vweird.f32 %v109_v51 }
  0x47   :  { %vm75_vm7 = vmor %vm73_vm5, %vm74_vm6 }
  0x48   :  { %v70_v54 = vsub.f32 1.0, %v69_v52 }
  0x4a   :  { %v71_v56 = vmul.f32 %v109_v51, %v70_v54 }
  0x4c   :  { %v72_v58 = vadd.f32 %v109_v51, %v71_v56 }
  0x4e   :  { %v76_v60 = vsel %vm75_vm7, %v109_v51, %v72_v58 }
  0x4f   :  { %v81_v61 = vsel %vm78_vm8, %v80_v57, %v76_v60 }
  0x50   :  { %v83_v62 = vmul.f32 %v82_v59, %v81_v61 }
  0x52   :  { %v84_v63 = vperm.slane %v83_v62, 0 }
  0x54   :  { %v85_v1 = vmul.f32 %v84_v63, %v34_v21  ;;  %v86_v2 = vmul.f32 %v84_v63, %v35_v22 }
  0x56   :  { %v91_v3 = vadd.f32 %v101_v0, %v85_v1  ;;  %v92_v4 = vadd.f32 %v101_v0, %v86_v2 }
  0x58   :  { %93 = vst.msk [vmem:[%s159_s3] sm:$0xff] %vm16_vm0, %v91_v3 }
  0x59   :  { %94 = vst.msk [vmem:[%s159_s3 + $0x8] sm:$0xff] %vm16_vm0, %v92_v4 }

</bundles_post_ra>
